<compile_context>
chip_gen: v7x
topology: tpu7x:2x2x1
jax: 0.10.0
libtpu: 0.0.40
codegen_flags: <defaults>
</compile_context>

<pallas_src>
import functools
import math

import jax
import jax.numpy as jnp
from jax.experimental import pallas as pl
from jax.experimental.pallas import tpu as pltpu


def _cdiv(a, b):
    return -(-a // b)


def _round_up(a, b):
    return _cdiv(a, b) * b


def _se_kernel(x_ref, w1t_ref, b1_ref, w2t_ref, b2_ref, o_ref, *, inv_hw):
    # x_ref  : (nb, Ck, HW)    w1t_ref: (Ck, Crk)   b1_ref: (1, Crk)
    # w2t_ref: (Crk, Ck)       b2_ref : (1, Ck)     o_ref : (nb, Ck, HW)
    x = x_ref[...]

    # AdaptiveAvgPool2d(1): f32-accumulating sum over the spatial (lane) axis,
    # scaled by 1/HW (no full-block f32 upcast of x).
    pooled = jnp.sum(x, axis=-1, dtype=jnp.float32) * inv_hw          # (nb, Ck)

    # fc1 (1x1 conv == dense) + ReLU, lane-dense MXU operands.
    h = jnp.dot(pooled, w1t_ref[...], preferred_element_type=jnp.float32)
    h = jnp.maximum(h + b1_ref[...], 0.0)                             # (nb, Crk)

    # fc2 + sigmoid (EUP; hidden under the block DMA).
    s = jnp.dot(h, w2t_ref[...], preferred_element_type=jnp.float32)
    s = jax.nn.sigmoid(s + b2_ref[...])                               # (nb, Ck)

    # Per-channel rescale of the original input in its own dtype.
    o_ref[...] = x * s.astype(x.dtype)[:, :, None]


def se_module(x, w1, b1, w2, b2, *, block_bytes_budget=4 << 20):
    """SE forward. x: (N, C, H, W); w1: (Cr, C); b1: (Cr,); w2: (C, Cr); b2: (C,)."""
    N, C, H, W = x.shape
    Cr = w1.shape[0]
    HW = H * W
    itemsize = jnp.dtype(x.dtype).itemsize

    # ---- sublane-density fold: view g images as one image with g*C channels.
    g = 1
    if C % 8 != 0:
        g_try = 8 // math.gcd(C, 8)
        # Fold only when it is free (N divisible) and block-diag weights stay tiny.
        if N % g_try == 0 and (g_try * C) * (g_try * max(Cr, 1)) <= (1 << 18):
            g = g_try
    Nk, Ck, Crk = N // g, g * C, g * Cr

    x_flat = x.reshape(Nk, Ck, HW)            # metadata-only reshape (contiguous)

    # Lane-dense small operands: pre-transposed weights, row-vector biases.
    if g > 1:
        eye = jnp.eye(g, dtype=w1.dtype)
        w1t = jnp.kron(eye, w1.T)                       # (Ck, Crk) block-diagonal
        w2t = jnp.kron(eye.astype(w2.dtype), w2.T)      # (Crk, Ck) block-diagonal
        b1r = jnp.tile(b1, g).reshape(1, Crk)
        b2r = jnp.tile(b2, g).reshape(1, Ck)
    else:
        w1t, w2t = w1.T, w2.T
        b1r, b2r = b1.reshape(1, Cr), b2.reshape(1, C)

    # ---- batch-block size: budget-driven; grid = cdiv (partial last block OK).
    ck_pad = _round_up(Ck, 8)                 # sublane padding inside VMEM tiles
    hw_pad = _round_up(HW, 128)               # lane padding inside VMEM tiles
    per_img = ck_pad * hw_pad * itemsize
    nb = max(1, min(Nk, block_bytes_budget // per_img))
    # TODO(synk): a single image bigger than the block budget still runs as one
    # nb=1 block; extreme C*HW shapes would additionally need channel tiling.

    steps = _cdiv(Nk, nb)
    # v7x megacore: aim for >=2 steps (>=4 on larger inputs) and an even step
    # count so both TensorCores get equal work; harmless on v5e/v6e.
    min_steps = 1
    if Nk >= 2:
        min_steps = 2
    if Nk >= 4 and Nk * per_img >= (2 << 20):
        min_steps = 4
    if steps < min_steps:
        nb = _cdiv(Nk, min_steps)
        steps = _cdiv(Nk, nb)
    if steps > 1 and steps % 2 == 1:
        for cand in range(nb, max(nb - 8, 1) - 1, -1):
            if _cdiv(Nk, cand) % 2 == 0:
                nb = cand
                steps = _cdiv(Nk, cand)
                break
    grid = (steps,)

    # ---- VMEM limit sized to actual need (in+out double-buffered + slack).
    block_bytes = nb * per_img
    weight_bytes = int(sum(a.size * a.dtype.itemsize for a in (w1t, b1r, w2t, b2r)))
    vmem_need = 4 * block_bytes + nb * ck_pad * hw_pad * 4 + weight_bytes + (4 << 20)
    vmem_limit = int(min(max(vmem_need, 16 << 20), 64 << 20))

    cost = pl.CostEstimate(
        flops=N * (4 * C * Cr + 2 * C * HW),             # matmuls + pool + rescale
        transcendentals=N * C,                           # sigmoid
        bytes_accessed=2 * N * C * HW * itemsize + weight_bytes,
    )

    kernel = functools.partial(_se_kernel, inv_hw=1.0 / HW)

    out = pl.pallas_call(
        kernel,
        out_shape=jax.ShapeDtypeStruct((Nk, Ck, HW), x.dtype),
        grid_spec=pltpu.PrefetchScalarGridSpec(
            num_scalar_prefetch=0,
            grid=grid,
            in_specs=[
                pl.BlockSpec((nb, Ck, HW), lambda n: (n, 0, 0)),
                pl.BlockSpec((Ck, Crk), lambda n: (0, 0)),
                pl.BlockSpec((1, Crk), lambda n: (0, 0)),
                pl.BlockSpec((Crk, Ck), lambda n: (0, 0)),
                pl.BlockSpec((1, Ck), lambda n: (0, 0)),
            ],
            out_specs=pl.BlockSpec((nb, Ck, HW), lambda n: (n, 0, 0)),
        ),
        compiler_params=pltpu.CompilerParams(
            dimension_semantics=("parallel",),
            vmem_limit_bytes=vmem_limit,
        ),
        cost_estimate=cost,
    )(x_flat, w1t, b1r, w2t, b2r)

    return out.reshape(N, C, H, W)


def _reference(x, w1, b1, w2, b2):
    pooled = jnp.mean(x, axis=(2, 3))                       # (N, C)
    h = jnp.maximum(pooled @ w1.T + b1, 0.0)                # (N, Cr)
    s = jax.nn.sigmoid(h @ w2.T + b2)                       # (N, C)
    return x * s[:, :, None, None]


if __name__ == "__main__":
    key = jax.random.PRNGKey(0)

    # Primary check: module-spec shapes (batch=2, channels=4, reduction=2).
    N, C, H, W = 2, 4, 16, 16
    Cr = C // 2
    kx, k1, k2, k3, k4, key = jax.random.split(key, 6)
    x = jax.random.normal(kx, (N, C, H, W), dtype=jnp.float32)
    w1 = jax.random.normal(k1, (Cr, C), dtype=jnp.float32) * 0.5
    b1 = jax.random.normal(k2, (Cr,), dtype=jnp.float32) * 0.1
    w2 = jax.random.normal(k3, (C, Cr), dtype=jnp.float32) * 0.5
    b2 = jax.random.normal(k4, (C,), dtype=jnp.float32) * 0.1

    out = se_module(x, w1, b1, w2, b2)
    jax.block_until_ready(out)
    ref = _reference(x, w1, b1, w2, b2)
    assert out.shape == (N, C, H, W)
    assert jnp.allclose(out, ref, atol=1e-5, rtol=1e-5)

    # Secondary check: C multiple of 8 (no fold), HW not a multiple of 128
    # (masked lane-tail stores), and a cdiv grid with a partial last block.
    N2, C2, H2, W2 = 5, 16, 7, 7
    Cr2 = C2 // 4
    kx, k1, k2, k3, k4, key = jax.random.split(key, 6)
    x2 = jax.random.normal(kx, (N2, C2, H2, W2), dtype=jnp.float32)
    w1b = jax.random.normal(k1, (Cr2, C2), dtype=jnp.float32) * 0.5
    b1b = jax.random.normal(k2, (Cr2,), dtype=jnp.float32) * 0.1
    w2b = jax.random.normal(k3, (C2, Cr2), dtype=jnp.float32) * 0.5
    b2b = jax.random.normal(k4, (C2,), dtype=jnp.float32) * 0.1

    out2 = se_module(x2, w1b, b1b, w2b, b2b)
    jax.block_until_ready(out2)
    ref2 = _reference(x2, w1b, b1b, w2b, b2b)
    assert out2.shape == (N2, C2, H2, W2)
    assert jnp.allclose(out2, ref2, atol=1e-5, rtol=1e-5)

    print("KERNEL_OK")
</pallas_src>

<mosaic_0001>
module attributes {stable_mosaic.version = 11 : i64} {
  func.func @_se_kernel(%arg0: i32, %arg1: memref<1x8x256xf32, #tpu.memory_space<vmem>>, %arg2: memref<8x4xf32, #tpu.memory_space<vmem>>, %arg3: memref<1x4xf32, #tpu.memory_space<vmem>>, %arg4: memref<4x8xf32, #tpu.memory_space<vmem>>, %arg5: memref<1x8xf32, #tpu.memory_space<vmem>>, %arg6: memref<1x8x256xf32, #tpu.memory_space<vmem>>) attributes {dimension_semantics = [#tpu.dimension_semantics<parallel>], iteration_bounds = array<i64: 1>, scalar_prefetch = 0 : i64, scratch_operands = 0 : i64, tpu.core_type = #tpu.core_type<tc>, window_params = [{transform_indices = @transform_0, window_bounds = array<i64: 1, 8, 256>}, {pipeline_mode = #tpu.pipeline_mode<synchronous>, transform_indices = @transform_1, window_bounds = array<i64: 8, 4>}, {pipeline_mode = #tpu.pipeline_mode<synchronous>, transform_indices = @transform_2, window_bounds = array<i64: 1, 4>}, {pipeline_mode = #tpu.pipeline_mode<synchronous>, transform_indices = @transform_3, window_bounds = array<i64: 4, 8>}, {pipeline_mode = #tpu.pipeline_mode<synchronous>, transform_indices = @transform_4, window_bounds = array<i64: 1, 8>}, {transform_indices = @transform_5, window_bounds = array<i64: 1, 8, 256>}]} {
    %c0 = arith.constant 0 : index
    %c0_0 = arith.constant 0 : index
    %c0_1 = arith.constant 0 : index
    %0 = vector.load %arg1[%c0, %c0_0, %c0_1] : memref<1x8x256xf32, #tpu.memory_space<vmem>>, vector<1x8x256xf32>
    %cst = arith.constant dense<0.000000e+00> : vector<1x8xf32>
    %1 = vector.multi_reduction <add>, %0, %cst [2] : vector<1x8x256xf32> to vector<1x8xf32>
    %cst_2 = arith.constant 3.906250e-03 : f32
    %2 = vector.broadcast %cst_2 : f32 to vector<1x8xf32>
    %3 = arith.mulf %1, %2 : vector<1x8xf32>
    %c0_3 = arith.constant 0 : index
    %c0_4 = arith.constant 0 : index
    %4 = vector.load %arg2[%c0_3, %c0_4] : memref<8x4xf32, #tpu.memory_space<vmem>>, vector<8x4xf32>
    %cst_5 = arith.constant dense<0.000000e+00> : vector<1x4xf32>
    %5 = tpu.matmul %3, %4, %cst_5 {dimension_numbers = #tpu.dot_dimension_numbers<[1], [0], [0], [1], [0, 0, 1, 1], [], []>} : vector<1x8xf32>, vector<8x4xf32>, vector<1x4xf32> -> vector<1x4xf32>
    %c0_6 = arith.constant 0 : index
    %c0_7 = arith.constant 0 : index
    %6 = vector.load %arg3[%c0_6, %c0_7] : memref<1x4xf32, #tpu.memory_space<vmem>>, vector<1x4xf32>
    %7 = arith.addf %5, %6 : vector<1x4xf32>
    %cst_8 = arith.constant 0.000000e+00 : f32
    %8 = vector.broadcast %cst_8 : f32 to vector<1x4xf32>
    %9 = arith.maximumf %7, %8 : vector<1x4xf32>
    %c0_9 = arith.constant 0 : index
    %c0_10 = arith.constant 0 : index
    %10 = vector.load %arg4[%c0_9, %c0_10] : memref<4x8xf32, #tpu.memory_space<vmem>>, vector<4x8xf32>
    %cst_11 = arith.constant dense<0.000000e+00> : vector<1x8xf32>
    %11 = tpu.matmul %9, %10, %cst_11 {dimension_numbers = #tpu.dot_dimension_numbers<[1], [0], [0], [1], [0, 0, 1, 1], [], []>} : vector<1x4xf32>, vector<4x8xf32>, vector<1x8xf32> -> vector<1x8xf32>
    %c0_12 = arith.constant 0 : index
    %c0_13 = arith.constant 0 : index
    %12 = vector.load %arg5[%c0_12, %c0_13] : memref<1x8xf32, #tpu.memory_space<vmem>>, vector<1x8xf32>
    %13 = arith.addf %11, %12 : vector<1x8xf32>
    %14 = arith.negf %13 : vector<1x8xf32>
    %15 = math.exp %14 : vector<1x8xf32>
    %cst_14 = arith.constant 1.000000e+00 : f32
    %16 = vector.broadcast %cst_14 : f32 to vector<1x8xf32>
    %17 = arith.addf %16, %15 : vector<1x8xf32>
    %18 = arith.divf %16, %17 : vector<1x8xf32>
    %19 = vector.shape_cast %18 : vector<1x8xf32> to vector<1x8x1xf32>
    %20 = vector.broadcast %19 : vector<1x8x1xf32> to vector<1x8x256xf32>
    %21 = arith.mulf %0, %20 : vector<1x8x256xf32>
    %c0_15 = arith.constant 0 : index
    %c0_16 = arith.constant 0 : index
    %c0_17 = arith.constant 0 : index
    %22 = vector.load %arg6[%c0_15, %c0_16, %c0_17] : memref<1x8x256xf32, #tpu.memory_space<vmem>>, vector<1x8x256xf32>
    tpu.vector_store %arg6[%c0_15, %c0_16, %c0_17], %21 {strides = array<i32>} : memref<1x8x256xf32, #tpu.memory_space<vmem>>, vector<1x8x256xf32>,
    return
  }
  func.func @transform_0(%arg0: i32) -> (i32, i32, i32) {
    %c0_i32 = arith.constant 0 : i32
    %c0_i32_0 = arith.constant 0 : i32
    %c0_i32_1 = arith.constant 0 : i32
    return %arg0, %c0_i32, %c0_i32_0 : i32, i32, i32
  }
  func.func @transform_1(%arg0: i32) -> (i32, i32) {
    %c0_i32 = arith.constant 0 : i32
    %c0_i32_0 = arith.constant 0 : i32
    %c0_i32_1 = arith.constant 0 : i32
    return %c0_i32, %c0_i32_0 : i32, i32
  }
  func.func @transform_2(%arg0: i32) -> (i32, i32) {
    %c0_i32 = arith.constant 0 : i32
    %c0_i32_0 = arith.constant 0 : i32
    %c0_i32_1 = arith.constant 0 : i32
    return %c0_i32, %c0_i32_0 : i32, i32
  }
  func.func @transform_3(%arg0: i32) -> (i32, i32) {
    %c0_i32 = arith.constant 0 : i32
    %c0_i32_0 = arith.constant 0 : i32
    %c0_i32_1 = arith.constant 0 : i32
    return %c0_i32, %c0_i32_0 : i32, i32
  }
  func.func @transform_4(%arg0: i32) -> (i32, i32) {
    %c0_i32 = arith.constant 0 : i32
    %c0_i32_0 = arith.constant 0 : i32
    %c0_i32_1 = arith.constant 0 : i32
    return %c0_i32, %c0_i32_0 : i32, i32
  }
  func.func @transform_5(%arg0: i32) -> (i32, i32, i32) {
    %c0_i32 = arith.constant 0 : i32
    %c0_i32_0 = arith.constant 0 : i32
    %c0_i32_1 = arith.constant 0 : i32
    return %arg0, %c0_i32, %c0_i32_0 : i32, i32, i32
  }
}

</mosaic_0001>

<bundles_post_ra>
// kernel: tpu_custom_call.1
= control target key start
LH: loop header
LB: loop body
LE: loop exit
PB: predicated region body
PF: predicated region fallthrough
CT: control target
= control target key end

     0   :  { %10 = vsyncpa [#allocation3], 0  ;;  %s378_s0 = inlined_call_operand.hbm [shape: f32[1,8,256], index: 0, kind: input, shape index: {}]   ;;  %s379_s1 = inlined_call_operand.vmem [shape: f32[8,4], index: 1, kind: input, shape index: {}]   ;;  %s380_s2 = inlined_call_operand.vmem [shape: f32[1,4], index: 2, kind: input, shape index: {}]   ;;  %s381_s3 = inlined_call_operand.vmem [shape: f32[4,8], index: 3, kind: input, shape index: {}]   ;;  %s382_s4 = inlined_call_operand.vmem [shape: f32[1,8], index: 4, kind: input, shape index: {}]   ;;  %s383_s5 = inlined_call_operand.hbm [shape: f32[1,8,256], index: 5, kind: output, shape index: {}]  }
   0x1   :  { %11 = vsyncpa [#allocation4], 0  ;;  %s308_s18 = smov [#allocation2]   ;;  %s260_s22 = scalar_lea.hbm %s378_s0, 256 }
   0x2   :  { %s18_s19 = sshll.u32 %s308_s18, 4  ;;  %p261_p0 = scmp.ne.s32.totalorder %s378_s0, %s260_s22  ;;  %s19_s19 = int_to_ptr.vmem [resolvable:$true] %s18_s19 }
   0x3   :  { %p264_p1 = scmp.lt.u32.totalorder %s260_s22, %s378_s0 }
   0x5   :  { %p266_p2 = pnand %p264_p1, %p261_p0 }
   0x7   :  { %269 = shalt.err (!%p266_p2)
}
   0x8   :  { %s270_s27 = scalar_lea.vmem %s19_s19, 256  ;;  %p275_p4 = scmp.lt.s32.totalorder %s19_s19, %s19_s19 }
   0x9   :  { %p271_p3 = scmp.ne.s32.totalorder %s19_s19, %s270_s27  ;;  %p276_p5 = scmp.lt.s32.totalorder %s270_s27, %s270_s27 }
   0xb   :  { %p277_p6 = por %p276_p5, %p275_p4 }
   0xd   :  { %p278_p7 = pnand %p277_p6, %p271_p3 }
   0xf   :  { %281 = shalt.err (!%p278_p7)
}
  0x10   :  { %21 = dma.hbm_to_vmem [thread:$0]  %s378_s0, 256, %s19_s19, [#allocation3]  }
  0x11   :  { %304 = dma.done.wait [#allocation3], 256  }
  0x12   :  { %305 = vsyncadd [#allocation3], 4294967040  ;;  %v33_v0 = vld [vmem:[#allocation2] sm:$0xff]  ;;  %v34_v1 = vld [vmem:[#allocation2 + $0x8] sm:$0xff]  ;;  %v309_v3 = vmov 0.0   ;;  %vm310_vm0 = vmmov 0   ;;  %v42_v5 = vlaneseq }
  0x13   :  { %v35_v2 = vadd.f32 %v34_v1, %v33_v0  ;;  %242 = vmatprep.subr.mxu0 %v309_v3  ;;  %v39_v4 = vld [vmem:[%s379_s1] sm:$0xff]  ;;  %247 = vmatprep.subr.mxu1 %v309_v3  ;;  %vm48_vm1 = vcmask 64512   ;;  %vm128_vm2 = vcmask 1043456   ;;  %vm124_vm3 = vcmask 31744  }
  0x14   :  { %243 = vmatpush3.msra.mxu0 %v39_v4  ;;  %244 = vmatprep.mubr.msk.f32.mxu0 %vm310_vm0, %v309_v3  ;;  %v43_v6 = vand.u32 127, %v42_v5  ;;  %v45_v7 = vshrl.u32 %v42_v5, 7  ;;  %v122_v12 = vld [vmem:[%s381_s3] sm:$0xf] }
  0x15   :  { %36 = vadd.xlane.f32.xlu0 %v35_v2  ;;  %249 = vmatprep.mubr.msk.f32.mxu1 %vm310_vm0, %v309_v3  ;;  %v40_v13 = vld [vmem:[%s380_s2] sm:$0x1]  ;;  %s311_s2 = smov [#allocation5]  }
  0x16   :  { %v46_v8 = vsub.s32 %v43_v6, %v45_v7  ;;  %248 = vmatpush3.msk.msra.mxu1 %vm128_vm2, %v122_v12  ;;  %v123_v18 = vld [vmem:[%s382_s4] sm:$0x1]  ;;  %v210_v25 = vsub.s32 0, %v45_v7  ;;  %s225_s3 = sshll.u32 %s311_s2, 4  ;;  %s226_s3 = int_to_ptr.vmem [resolvable:$true] %s225_s3 }
  0x17   :  { %s282_s4 = scalar_lea.vmem %s226_s3, 256  ;;  %p287_p9 = scmp.lt.s32.totalorder %s226_s3, %s226_s3 }
  0x18   :  { %p283_p8 = scmp.ne.s32.totalorder %s226_s3, %s282_s4  ;;  %p288_p10 = scmp.lt.s32.totalorder %s282_s4, %s282_s4 }
  0x1a   :  { %p289_p11 = por %p288_p10, %p287_p9 }
  0x1c   :  { %p290_p12 = pnand %p289_p11, %p283_p8 }
  0xa2   :  { %v37_v9 = vpop.xlane.xlu0 %36 }
  0xa3   :  { %v38_v10 = vmul.f32 0.00390625, %v37_v9 }
  0xa5   :  { %v47_v11 = vrot.slane %v38_v10, %v46_v8 }
  0xa7   :  { %245 = vmatmul.mubr.msk.f32.vlgmr.msra.gmra.mrb[0].mxu0 %vm48_vm1, %v47_v11 }
 0x17a   :  { %v117_v14 = vpop.f32.mrb[0].mxu0 }
 0x17b   :  { %v118_v15 = vadd.f32 %v117_v14, %v40_v13  ;;  %v246_v16 = vpop.f32.mrb[1].mxu0 }
 0x17d   :  { %v121_v17 = vmax.f32 %v118_v15, 0.0 }
 0x17f   :  { %250 = vmatmul.mubr.msk.f32.vlgmr.msra.gmra.mrb[0].mxu1 %vm124_vm3, %v121_v17 }
 0x252   :  { %v198_v19 = vpop.f32.mrb[0].mxu1 }
 0x253   :  { %v199_v20 = vadd.f32 %v198_v19, %v123_v18  ;;  %v251_v21 = vpop.f32.mrb[1].mxu1 }
 0x255   :  { %v237_v22 = vmul.f32 -1.442695, %v199_v20 }
 0x257   :  { %256 = vpow2.f32 %v237_v22 }
 0x261   :  { %v257_v23 = vpop.eup %256 }
 0x262   :  { %v205_v24 = vadd.f32 1.0, %v257_v23 }
 0x264   :  { %258 = vrcp.f32 %v205_v24 }
 0x26e   :  { %v259_v26 = vpop.eup %258 }
 0x26f   :  { %v211_v27 = vrot.slane %v259_v26, %v210_v25 }
 0x271   :  { %213 = vbcast.lane.b32.xlu0 %v211_v27, 256 }
 0x2e3   :  { %v214_v28 = vpop.permute.xlu0 %213 }
 0x2e4   :  { %v215_v29 = vmul.f32 %v214_v28, %v33_v0  ;;  %v216_v30 = vmul.f32 %v214_v28, %v34_v1 }
 0x2e6   :  { %217 = vst [vmem:[#allocation5] sm:$0xff] %v215_v29  ;;  %218 = vst [vmem:[#allocation5 + $0x8] sm:$0xff] %v216_v30 }
 0x2e7   :  { %293 = shalt.err (!%p290_p12)
}
 0x2e8   :  { %s294_s13 = scalar_lea.hbm %s383_s5, 256 }
 0x2e9   :  { %p295_p13 = scmp.ne.s32.totalorder %s383_s5, %s294_s13  ;;  %p298_p0 = scmp.lt.u32.totalorder %s294_s13, %s383_s5 }
 0x2eb   :  { %p300_p1 = pnand %p298_p0, %p295_p13 }
 0x2ed   :  { %303 = shalt.err (!%p300_p1)
}
 0x2ee   :  { %228 = dma.vmem_to_hbm [thread:$0]  %s226_s3, 256, %s383_s5, [#allocation4]  }
 0x2ef   :  { %306 = dma.done.wait [#allocation4], 256  }
 0x2f0   :  { %307 = vsyncadd [#allocation4], 4294967040 }
 0x2f1   :  { %232 = vsyncpa [#allocation3], 1 }
 0x2f2   :  { %233 = vsyncpa [#allocation4], 1 }

</bundles_post_ra>
